<compile_context>
chip_gen: v7x
topology: tpu7x:2x2x1
jax: 0.10.0
libtpu: 0.0.40
codegen_flags: <defaults>
</compile_context>

<pallas_src>
import functools

import jax
import jax.numpy as jnp
from jax.experimental import pallas as pl
from jax.experimental.pallas import tpu as pltpu

_LANE = 128        # vreg lane width
_SUBLANE_F32 = 8   # f32 sublane packing (second-to-last dim alignment)


def _round_up(x, m):
    return ((x + m - 1) // m) * m


def _activation_fn(name):
    if name == "relu":
        return lambda x: jnp.maximum(x, 0.0)
    elif name == "leaky":
        return lambda x: jnp.where(x >= 0.0, x, 0.01 * x)
    elif name == "sigm":
        return jax.nn.sigmoid
    elif name == "tanh":
        return jnp.tanh
    elif name == "softplus":
        return jax.nn.softplus
    else:
        raise AssertionError("\nWrong activation name.")


def _fc2_kernel(x_ref, w1_ref, b1_ref, w2_ref, b2_ref, w3_ref, b3_ref, o_ref,
                h1_acc_ref, *, activation, softmax):
    """Grid = (batch tiles, layer-1 K tiles).  n_k == 1 when W1 is resident."""
    k = pl.program_id(1)
    n_k = pl.num_programs(1)

    @pl.when(k == 0)
    def _():
        h1_acc_ref[...] = jnp.zeros_like(h1_acc_ref)

    # Cast x to bf16 in-kernel (VPU) right before the MXU dot; accumulate f32.
    x = x_ref[...].astype(jnp.bfloat16)
    h1_acc_ref[...] += jnp.dot(x, w1_ref[...],
                               preferred_element_type=jnp.float32)

    @pl.when(k == n_k - 1)
    def _():
        act = _activation_fn(activation)
        h1 = act(h1_acc_ref[...] + b1_ref[...])
        h2 = act(jnp.dot(h1.astype(jnp.bfloat16), w2_ref[...],
                         preferred_element_type=jnp.float32) + b2_ref[...])
        # Output layer, lane-padded to 128.  With softmax=True the padded bias
        # columns carry -1e30 (and the padded W3 columns are zero), so exp()
        # of the padded logits is exactly 0 and they drop out of the denom.
        logits = jnp.dot(h2.astype(jnp.bfloat16), w3_ref[...],
                         preferred_element_type=jnp.float32) + b3_ref[...]
        if softmax:
            m = jnp.max(logits, axis=-1, keepdims=True)
            e = jnp.exp(logits - m)
            logits = e / jnp.sum(e, axis=-1, keepdims=True)  # exact normalize
        o_ref[...] = logits.astype(o_ref.dtype)


def _vmem_budget_bytes():
    """Generation-dependent VMEM budget (v5e/v6e: 128 MiB, v7x: 64 MiB)."""
    cap = 64 * 1024 * 1024  # conservative fallback (v7x-sized)
    try:
        info = pltpu.get_tpu_info()
        cap = int(getattr(info, "vmem_capacity_bytes", cap))
    except Exception:
        pass
    return int(cap * 4 // 5)  # leave ~20% headroom for compiler scratch


def _choose_tiles(B, D, H, OP, out_bytes, budget):
    """Pick (TB, TK): batch tile from the VMEM budget, K tile for layer 1."""
    margin = 2 * 1024 * 1024

    def resident_bytes(tk):
        w1_bufs = 1 if tk >= D else 2            # constant block -> 1 buffer
        return (w1_bufs * tk * H * 2             # W1 (slice), bf16
                + (H * H + H * OP) * 2           # W2, W3, bf16
                + (2 * H + OP) * 4)              # biases, f32

    def per_row_bytes(tk):
        return (2 * tk * 4                       # x tile (f32, double-buffered)
                + 2 * OP * out_bytes             # out tile (double-buffered)
                + (3 * H + OP) * 4)              # h1 acc + live f32 temporaries

    # Prefer W1 fully resident (single K step); otherwise K-tile layer 1.
    tk = D
    if resident_bytes(tk) + 8 * per_row_bytes(tk) + margin > budget:
        tk = 1024
        while tk > _LANE and (resident_bytes(tk) + 8 * per_row_bytes(tk)
                              + margin > budget):
            tk //= 2

    avail = max(budget - resident_bytes(tk) - margin, 8 * per_row_bytes(tk))
    tb = max(_SUBLANE_F32,
             min(1024,
                 (avail // per_row_bytes(tk)) // _SUBLANE_F32 * _SUBLANE_F32))
    bp8 = _round_up(B, _SUBLANE_F32)
    tb = min(tb, bp8)
    # Keep >=2 batch steps when there is enough work so ("parallel", ...) can
    # shard the batch axis across both TensorCores on v7x.
    if tb >= bp8 and bp8 >= 2 * _SUBLANE_F32:
        tb = _round_up(bp8 // 2, _SUBLANE_F32)
    return tb, tk


def base_nn_forward(x_nchw, params, *, activation="relu", softmax=False,
                    out_dtype=jnp.float32):
    """Forward pass of baseNN (fc2 arch). x_nchw: (B, C, H, W).

    out_dtype=jnp.bfloat16 halves the padded-output writeback if downstream
    tolerates it; default stays f32 for parity with the PyTorch logits.
    """
    w1, b1, w2, b2, w3, b3 = params
    B = int(x_nchw.shape[0])
    D = int(x_nchw.shape[1] * x_nchw.shape[2] * x_nchw.shape[3])
    H = int(w1.shape[1])
    O = int(w3.shape[1])
    OP = _round_up(O, _LANE)  # lane-dense output width

    budget = _vmem_budget_bytes()
    out_bytes = jnp.dtype(out_dtype).itemsize
    TB, TK = _choose_tiles(B, D, H, OP, out_bytes, budget)

    BP = _round_up(B, TB)
    DP = _round_up(D, TK)
    n_b, n_k = BP // TB, DP // TK

    # Free metadata reshape; no dtype cast pre-pass over x (cast is in-kernel).
    # Pad only when the tiles do not divide B (or D, K-tiled case).
    x2d = x_nchw.reshape(B, D)
    if BP != B or DP != D:
        x2d = jnp.pad(x2d, ((0, BP - B), (0, DP - D)))

    w1p = w1.astype(jnp.bfloat16)
    if DP != D:
        w1p = jnp.pad(w1p, ((0, DP - D), (0, 0)))
    w2b = w2.astype(jnp.bfloat16)
    w3p = jnp.pad(w3, ((0, 0), (0, OP - O))).astype(jnp.bfloat16)
    b1f = b1.astype(jnp.float32)
    b2f = b2.astype(jnp.float32)
    # Bake the lane-padding mask into b3: with softmax the padded logits are
    # -1e30 (exp -> 0); without softmax they are 0.  W3's padded columns are 0.
    pad_val = -1e30 if softmax else 0.0
    b3p = jnp.pad(b3.astype(jnp.float32), ((0, 0), (0, OP - O)),
                  constant_values=pad_val)

    kernel = functools.partial(_fc2_kernel, activation=activation,
                               softmax=softmax)

    flops = 2 * BP * (D * H + H * H + H * OP)
    transcendentals = BP * OP if softmax else 0
    if activation in ("sigm", "tanh", "softplus"):
        transcendentals += 2 * BP * H
    bytes_accessed = (BP * DP * x2d.dtype.itemsize
                      + (DP * H + H * H + H * OP) * 2 + (2 * H + OP) * 4
                      + BP * OP * out_bytes)
    cost = pl.CostEstimate(flops=flops, transcendentals=transcendentals,
                           bytes_accessed=bytes_accessed)

    w1_resident = (n_k == 1)

    def build_call(single_buffer_weights):
        def resident_spec(shape):
            # Constant index_map -> block never changes; single-buffer it so
            # resident weights don't eat 2x VMEM.
            if single_buffer_weights:
                return pl.BlockSpec(shape, lambda i, k: (0, 0),
                                    pipeline_mode=pl.Buffered(1))
            return pl.BlockSpec(shape, lambda i, k: (0, 0))

        if w1_resident:
            w1_spec = resident_spec((TK, H))
        else:
            w1_spec = pl.BlockSpec((TK, H), lambda i, k: (k, 0))

        return pl.pallas_call(
            kernel,
            out_shape=jax.ShapeDtypeStruct((BP, OP), out_dtype),
            grid=(n_b, n_k),
            in_specs=[
                pl.BlockSpec((TB, TK), lambda i, k: (i, k)),   # x: tiled
                w1_spec,                                       # w1
                resident_spec((1, H)),                         # b1
                resident_spec((H, H)),                         # w2
                resident_spec((1, H)),                         # b2
                resident_spec((H, OP)),                        # w3 (lane-padded)
                resident_spec((1, OP)),                        # b3 (lane-padded)
            ],
            out_specs=pl.BlockSpec((TB, OP), lambda i, k: (i, 0)),
            scratch_shapes=[pltpu.VMEM((TB, H), jnp.float32)],  # h1 accumulator
            compiler_params=pltpu.CompilerParams(
                dimension_semantics=("parallel", "arbitrary"),
                vmem_limit_bytes=budget),
            cost_estimate=cost,
        )

    args = (x2d, w1p, b1f, w2b, b2f, w3p, b3p)
    try:
        out = build_call(True)(*args)
    except Exception:
        # Fallback for JAX builds that reject pipeline_mode=pl.Buffered(1).
        out = build_call(False)(*args)

    return out[:B, :O]


def init_params(key, input_size, hidden_size, output_size):
    """Init mimicking torch.nn.Linear default (uniform +-1/sqrt(fan_in)).

    Weights stored as (in_features, out_features); biases as (1, out_features)."""
    ks = jax.random.split(key, 6)

    def linear(kw, kb, fan_in, fan_out):
        bound = 1.0 / jnp.sqrt(jnp.float32(fan_in))
        w = jax.random.uniform(kw, (fan_in, fan_out), jnp.float32, -bound, bound)
        b = jax.random.uniform(kb, (1, fan_out), jnp.float32, -bound, bound)
        return w, b

    w1, b1 = linear(ks[0], ks[1], input_size, hidden_size)
    w2, b2 = linear(ks[2], ks[3], hidden_size, hidden_size)
    w3, b3 = linear(ks[4], ks[5], hidden_size, output_size)
    return (w1, b1, w2, b2, w3, b3)


if __name__ == "__main__":
    # Small shapes consistent with the module: input_shape=(C,H,W)=(1,16,16),
    # hidden_size=32 (power of 2, >=16), output_size=10, batch=2.
    key = jax.random.PRNGKey(0)
    k_x, k_p = jax.random.split(key)

    B, C, H_img, W_img = 2, 1, 16, 16
    hidden_size = 32
    output_size = 10
    input_size = C * H_img * W_img

    x = jax.random.normal(k_x, (B, C, H_img, W_img), jnp.float32)
    params = init_params(k_p, input_size, hidden_size, output_size)

    logits = base_nn_forward(x, params, activation="relu", softmax=False)
    jax.block_until_ready(logits)
    assert logits.shape == (B, output_size)

    # Reference in plain JAX with the same bf16-cast matmul operands and f32
    # accumulation (HIGHEST precision) — matches the kernel's math.
    w1, b1, w2, b2, w3, b3 = params
    hp = jax.lax.Precision.HIGHEST
    bf = lambda a: a.astype(jnp.bfloat16).astype(jnp.float32)
    xf = bf(x.reshape(B, -1))
    ref = jnp.maximum(jnp.dot(xf, bf(w1), precision=hp) + b1, 0.0)
    ref = jnp.maximum(jnp.dot(bf(ref), bf(w2), precision=hp) + b2, 0.0)
    ref = jnp.dot(bf(ref), bf(w3), precision=hp) + b3
    assert jnp.allclose(logits, ref, atol=1e-3, rtol=1e-3), (
        float(jnp.max(jnp.abs(logits - ref))))

    # Exercise the softmax path (padding mask baked into b3; exact divide).
    probs = base_nn_forward(x, params, activation="relu", softmax=True)
    jax.block_until_ready(probs)
    assert probs.shape == (B, output_size)
    assert jnp.all(probs >= 0.0)
    assert jnp.allclose(jnp.sum(probs, axis=-1), 1.0, atol=1e-3)
    ref_probs = jax.nn.softmax(ref, axis=-1)
    assert jnp.allclose(probs, ref_probs, atol=1e-3, rtol=1e-3)

    print("KERNEL_OK")
</pallas_src>

<mosaic_0001>
module attributes {stable_mosaic.version = 11 : i64} {
  func.func @_fc2_kernel(%arg0: i32, %arg1: i32, %arg2: memref<8x256xf32, #tpu.memory_space<vmem>>, %arg3: memref<256x32xbf16, #tpu.memory_space<vmem>>, %arg4: memref<1x32xf32, #tpu.memory_space<vmem>>, %arg5: memref<32x32xbf16, #tpu.memory_space<vmem>>, %arg6: memref<1x32xf32, #tpu.memory_space<vmem>>, %arg7: memref<32x128xbf16, #tpu.memory_space<vmem>>, %arg8: memref<1x128xf32, #tpu.memory_space<vmem>>, %arg9: memref<8x128xf32, #tpu.memory_space<vmem>>, %arg10: memref<8x32xf32, #tpu.memory_space<vmem>>) attributes {dimension_semantics = [#tpu.dimension_semantics<parallel>, #tpu.dimension_semantics<arbitrary>], iteration_bounds = array<i64: 1, 1>, scalar_prefetch = 0 : i64, scratch_operands = 1 : i64, tpu.core_type = #tpu.core_type<tc>, window_params = [{transform_indices = @transform_0, window_bounds = array<i64: 8, 256>}, {pipeline_mode = #tpu.pipeline_mode<synchronous>, transform_indices = @transform_1, window_bounds = array<i64: 256, 32>}, {pipeline_mode = #tpu.pipeline_mode<synchronous>, transform_indices = @transform_2, window_bounds = array<i64: 1, 32>}, {pipeline_mode = #tpu.pipeline_mode<synchronous>, transform_indices = @transform_3, window_bounds = array<i64: 32, 32>}, {pipeline_mode = #tpu.pipeline_mode<synchronous>, transform_indices = @transform_4, window_bounds = array<i64: 1, 32>}, {pipeline_mode = #tpu.pipeline_mode<synchronous>, transform_indices = @transform_5, window_bounds = array<i64: 32, 128>}, {pipeline_mode = #tpu.pipeline_mode<synchronous>, transform_indices = @transform_6, window_bounds = array<i64: 1, 128>}, {transform_indices = @transform_7, window_bounds = array<i64: 8, 128>}]} {
    %c0_i32 = arith.constant 0 : i32
    %0 = arith.cmpi eq, %arg1, %c0_i32 : i32
    %1 = arith.extui %0 : i1 to i32
    %c0_i32_0 = arith.constant 0 : i32
    %2 = arith.cmpi ne, %1, %c0_i32_0 : i32
    scf.if %2 {
      %cst_10 = arith.constant 0.000000e+00 : f32
      %13 = vector.broadcast %cst_10 : f32 to vector<8x32xf32>
      %c0_11 = arith.constant 0 : index
      %c0_12 = arith.constant 0 : index
      %14 = vector.load %arg10[%c0_11, %c0_12] : memref<8x32xf32, #tpu.memory_space<vmem>>, vector<8x32xf32>
      tpu.vector_store %arg10[%c0_11, %c0_12], %13 {strides = array<i32>} : memref<8x32xf32, #tpu.memory_space<vmem>>, vector<8x32xf32>,
    } else {
    }
    %c0 = arith.constant 0 : index
    %c0_1 = arith.constant 0 : index
    %3 = vector.load %arg2[%c0, %c0_1] : memref<8x256xf32, #tpu.memory_space<vmem>>, vector<8x256xf32>
    %4 = arith.truncf %3 : vector<8x256xf32> to vector<8x256xbf16>
    %c0_2 = arith.constant 0 : index
    %c0_3 = arith.constant 0 : index
    %5 = vector.load %arg10[%c0_2, %c0_3] : memref<8x32xf32, #tpu.memory_space<vmem>>, vector<8x32xf32>
    %c0_4 = arith.constant 0 : index
    %c0_5 = arith.constant 0 : index
    %6 = vector.load %arg3[%c0_4, %c0_5] : memref<256x32xbf16, #tpu.memory_space<vmem>>, vector<256x32xbf16>
    %cst = arith.constant dense<0.000000e+00> : vector<8x32xf32>
    %7 = tpu.matmul %4, %6, %cst {dimension_numbers = #tpu.dot_dimension_numbers<[1], [0], [0], [1], [0, 0, 1, 1], [], []>} : vector<8x256xbf16>, vector<256x32xbf16>, vector<8x32xf32> -> vector<8x32xf32>
    %8 = arith.addf %5, %7 : vector<8x32xf32>
    %c0_6 = arith.constant 0 : index
    %c0_7 = arith.constant 0 : index
    %9 = vector.load %arg10[%c0_6, %c0_7] : memref<8x32xf32, #tpu.memory_space<vmem>>, vector<8x32xf32>
    tpu.vector_store %arg10[%c0_6, %c0_7], %8 {strides = array<i32>} : memref<8x32xf32, #tpu.memory_space<vmem>>, vector<8x32xf32>,
    %c0_i32_8 = arith.constant 0 : i32
    %10 = arith.cmpi eq, %arg1, %c0_i32_8 : i32
    %11 = arith.extui %10 : i1 to i32
    %c0_i32_9 = arith.constant 0 : i32
    %12 = arith.cmpi ne, %11, %c0_i32_9 : i32
    scf.if %12 {
      %c0_10 = arith.constant 0 : index
      %c0_11 = arith.constant 0 : index
      %13 = vector.load %arg10[%c0_10, %c0_11] : memref<8x32xf32, #tpu.memory_space<vmem>>, vector<8x32xf32>
      %c0_12 = arith.constant 0 : index
      %c0_13 = arith.constant 0 : index
      %14 = vector.load %arg4[%c0_12, %c0_13] : memref<1x32xf32, #tpu.memory_space<vmem>>, vector<1x32xf32>
      %15 = vector.broadcast %14 : vector<1x32xf32> to vector<8x32xf32>
      %16 = arith.addf %13, %15 : vector<8x32xf32>
      %cst_14 = arith.constant 0.000000e+00 : f32
      %17 = vector.broadcast %cst_14 : f32 to vector<8x32xf32>
      %18 = arith.maximumf %16, %17 : vector<8x32xf32>
      %19 = arith.truncf %18 : vector<8x32xf32> to vector<8x32xbf16>
      %c0_15 = arith.constant 0 : index
      %c0_16 = arith.constant 0 : index
      %20 = vector.load %arg5[%c0_15, %c0_16] : memref<32x32xbf16, #tpu.memory_space<vmem>>, vector<32x32xbf16>
      %cst_17 = arith.constant dense<0.000000e+00> : vector<8x32xf32>
      %21 = tpu.matmul %19, %20, %cst_17 {dimension_numbers = #tpu.dot_dimension_numbers<[1], [0], [0], [1], [0, 0, 1, 1], [], []>} : vector<8x32xbf16>, vector<32x32xbf16>, vector<8x32xf32> -> vector<8x32xf32>
      %c0_18 = arith.constant 0 : index
      %c0_19 = arith.constant 0 : index
      %22 = vector.load %arg6[%c0_18, %c0_19] : memref<1x32xf32, #tpu.memory_space<vmem>>, vector<1x32xf32>
      %23 = vector.broadcast %22 : vector<1x32xf32> to vector<8x32xf32>
      %24 = arith.addf %21, %23 : vector<8x32xf32>
      %cst_20 = arith.constant 0.000000e+00 : f32
      %25 = vector.broadcast %cst_20 : f32 to vector<8x32xf32>
      %26 = arith.maximumf %24, %25 : vector<8x32xf32>
      %27 = arith.truncf %26 : vector<8x32xf32> to vector<8x32xbf16>
      %c0_21 = arith.constant 0 : index
      %c0_22 = arith.constant 0 : index
      %28 = vector.load %arg7[%c0_21, %c0_22] : memref<32x128xbf16, #tpu.memory_space<vmem>>, vector<32x128xbf16>
      %cst_23 = arith.constant dense<0.000000e+00> : vector<8x128xf32>
      %29 = tpu.matmul %27, %28, %cst_23 {dimension_numbers = #tpu.dot_dimension_numbers<[1], [0], [0], [1], [0, 0, 1, 1], [], []>} : vector<8x32xbf16>, vector<32x128xbf16>, vector<8x128xf32> -> vector<8x128xf32>
      %c0_24 = arith.constant 0 : index
      %c0_25 = arith.constant 0 : index
      %30 = vector.load %arg8[%c0_24, %c0_25] : memref<1x128xf32, #tpu.memory_space<vmem>>, vector<1x128xf32>
      %31 = vector.broadcast %30 : vector<1x128xf32> to vector<8x128xf32>
      %32 = arith.addf %29, %31 : vector<8x128xf32>
      %c0_26 = arith.constant 0 : index
      %c0_27 = arith.constant 0 : index
      %33 = vector.load %arg9[%c0_26, %c0_27] : memref<8x128xf32, #tpu.memory_space<vmem>>, vector<8x128xf32>
      tpu.vector_store %arg9[%c0_26, %c0_27], %32 {strides = array<i32>} : memref<8x128xf32, #tpu.memory_space<vmem>>, vector<8x128xf32>,
    } else {
    }
    return
  }
  func.func @transform_0(%arg0: i32, %arg1: i32) -> (i32, i32) {
    %c0_i32 = arith.constant 0 : i32
    return %arg0, %arg1 : i32, i32
  }
  func.func @transform_1(%arg0: i32, %arg1: i32) -> (i32, i32) {
    %c0_i32 = arith.constant 0 : i32
    %c0_i32_0 = arith.constant 0 : i32
    %c0_i32_1 = arith.constant 0 : i32
    return %c0_i32, %c0_i32_0 : i32, i32
  }
  func.func @transform_2(%arg0: i32, %arg1: i32) -> (i32, i32) {
    %c0_i32 = arith.constant 0 : i32
    %c0_i32_0 = arith.constant 0 : i32
    %c0_i32_1 = arith.constant 0 : i32
    return %c0_i32, %c0_i32_0 : i32, i32
  }
  func.func @transform_3(%arg0: i32, %arg1: i32) -> (i32, i32) {
    %c0_i32 = arith.constant 0 : i32
    %c0_i32_0 = arith.constant 0 : i32
    %c0_i32_1 = arith.constant 0 : i32
    return %c0_i32, %c0_i32_0 : i32, i32
  }
  func.func @transform_4(%arg0: i32, %arg1: i32) -> (i32, i32) {
    %c0_i32 = arith.constant 0 : i32
    %c0_i32_0 = arith.constant 0 : i32
    %c0_i32_1 = arith.constant 0 : i32
    return %c0_i32, %c0_i32_0 : i32, i32
  }
  func.func @transform_5(%arg0: i32, %arg1: i32) -> (i32, i32) {
    %c0_i32 = arith.constant 0 : i32
    %c0_i32_0 = arith.constant 0 : i32
    %c0_i32_1 = arith.constant 0 : i32
    return %c0_i32, %c0_i32_0 : i32, i32
  }
  func.func @transform_6(%arg0: i32, %arg1: i32) -> (i32, i32) {
    %c0_i32 = arith.constant 0 : i32
    %c0_i32_0 = arith.constant 0 : i32
    %c0_i32_1 = arith.constant 0 : i32
    return %c0_i32, %c0_i32_0 : i32, i32
  }
  func.func @transform_7(%arg0: i32, %arg1: i32) -> (i32, i32) {
    %c0_i32 = arith.constant 0 : i32
    %c0_i32_0 = arith.constant 0 : i32
    return %arg0, %c0_i32 : i32, i32
  }
}

module attributes {stable_mosaic.version = 11 : i64} {
  func.func @_fc2_kernel(%arg0: i32, %arg1: i32, %arg2: memref<8x256xf32, #tpu.memory_space<vmem>>, %arg3: memref<256x32xbf16, #tpu.memory_space<vmem>>, %arg4: memref<1x32xf32, #tpu.memory_space<vmem>>, %arg5: memref<32x32xbf16, #tpu.memory_space<vmem>>, %arg6: memref<1x32xf32, #tpu.memory_space<vmem>>, %arg7: memref<32x128xbf16, #tpu.memory_space<vmem>>, %arg8: memref<1x128xf32, #tpu.memory_space<vmem>>, %arg9: memref<8x128xf32, #tpu.memory_space<vmem>>, %arg10: memref<8x32xf32, #tpu.memory_space<vmem>>) attributes {dimension_semantics = [#tpu.dimension_semantics<parallel>, #tpu.dimension_semantics<arbitrary>], iteration_bounds = array<i64: 1, 1>, scalar_prefetch = 0 : i64, scratch_operands = 1 : i64, tpu.core_type = #tpu.core_type<tc>, window_params = [{transform_indices = @transform_0, window_bounds = array<i64: 8, 256>}, {pipeline_mode = #tpu.pipeline_mode<synchronous>, transform_indices = @transform_1, window_bounds = array<i64: 256, 32>}, {pipeline_mode = #tpu.pipeline_mode<synchronous>, transform_indices = @transform_2, window_bounds = array<i64: 1, 32>}, {pipeline_mode = #tpu.pipeline_mode<synchronous>, transform_indices = @transform_3, window_bounds = array<i64: 32, 32>}, {pipeline_mode = #tpu.pipeline_mode<synchronous>, transform_indices = @transform_4, window_bounds = array<i64: 1, 32>}, {pipeline_mode = #tpu.pipeline_mode<synchronous>, transform_indices = @transform_5, window_bounds = array<i64: 32, 128>}, {pipeline_mode = #tpu.pipeline_mode<synchronous>, transform_indices = @transform_6, window_bounds = array<i64: 1, 128>}, {transform_indices = @transform_7, window_bounds = array<i64: 8, 128>}]} {
    %c0_i32 = arith.constant 0 : i32
    %0 = arith.cmpi eq, %arg1, %c0_i32 : i32
    %1 = arith.extui %0 : i1 to i32
    %c0_i32_0 = arith.constant 0 : i32
    %2 = arith.cmpi ne, %1, %c0_i32_0 : i32
    scf.if %2 {
      %cst_10 = arith.constant 0.000000e+00 : f32
      %13 = vector.broadcast %cst_10 : f32 to vector<8x32xf32>
      %c0_11 = arith.constant 0 : index
      %c0_12 = arith.constant 0 : index
      %14 = vector.load %arg10[%c0_11, %c0_12] : memref<8x32xf32, #tpu.memory_space<vmem>>, vector<8x32xf32>
      tpu.vector_store %arg10[%c0_11, %c0_12], %13 {strides = array<i32>} : memref<8x32xf32, #tpu.memory_space<vmem>>, vector<8x32xf32>,
    } else {
    }
    %c0 = arith.constant 0 : index
    %c0_1 = arith.constant 0 : index
    %3 = vector.load %arg2[%c0, %c0_1] : memref<8x256xf32, #tpu.memory_space<vmem>>, vector<8x256xf32>
    %4 = arith.truncf %3 : vector<8x256xf32> to vector<8x256xbf16>
    %c0_2 = arith.constant 0 : index
    %c0_3 = arith.constant 0 : index
    %5 = vector.load %arg10[%c0_2, %c0_3] : memref<8x32xf32, #tpu.memory_space<vmem>>, vector<8x32xf32>
    %c0_4 = arith.constant 0 : index
    %c0_5 = arith.constant 0 : index
    %6 = vector.load %arg3[%c0_4, %c0_5] : memref<256x32xbf16, #tpu.memory_space<vmem>>, vector<256x32xbf16>
    %cst = arith.constant dense<0.000000e+00> : vector<8x32xf32>
    %7 = tpu.matmul %4, %6, %cst {dimension_numbers = #tpu.dot_dimension_numbers<[1], [0], [0], [1], [0, 0, 1, 1], [], []>} : vector<8x256xbf16>, vector<256x32xbf16>, vector<8x32xf32> -> vector<8x32xf32>
    %8 = arith.addf %5, %7 : vector<8x32xf32>
    %c0_6 = arith.constant 0 : index
    %c0_7 = arith.constant 0 : index
    %9 = vector.load %arg10[%c0_6, %c0_7] : memref<8x32xf32, #tpu.memory_space<vmem>>, vector<8x32xf32>
    tpu.vector_store %arg10[%c0_6, %c0_7], %8 {strides = array<i32>} : memref<8x32xf32, #tpu.memory_space<vmem>>, vector<8x32xf32>,
    %c0_i32_8 = arith.constant 0 : i32
    %10 = arith.cmpi eq, %arg1, %c0_i32_8 : i32
    %11 = arith.extui %10 : i1 to i32
    %c0_i32_9 = arith.constant 0 : i32
    %12 = arith.cmpi ne, %11, %c0_i32_9 : i32
    scf.if %12 {
      %c0_10 = arith.constant 0 : index
      %c0_11 = arith.constant 0 : index
      %13 = vector.load %arg10[%c0_10, %c0_11] : memref<8x32xf32, #tpu.memory_space<vmem>>, vector<8x32xf32>
      %c0_12 = arith.constant 0 : index
      %c0_13 = arith.constant 0 : index
      %14 = vector.load %arg4[%c0_12, %c0_13] : memref<1x32xf32, #tpu.memory_space<vmem>>, vector<1x32xf32>
      %15 = vector.broadcast %14 : vector<1x32xf32> to vector<8x32xf32>
      %16 = arith.addf %13, %15 : vector<8x32xf32>
      %cst_14 = arith.constant 0.000000e+00 : f32
      %17 = vector.broadcast %cst_14 : f32 to vector<8x32xf32>
      %18 = arith.maximumf %16, %17 : vector<8x32xf32>
      %19 = arith.truncf %18 : vector<8x32xf32> to vector<8x32xbf16>
      %c0_15 = arith.constant 0 : index
      %c0_16 = arith.constant 0 : index
      %20 = vector.load %arg5[%c0_15, %c0_16] : memref<32x32xbf16, #tpu.memory_space<vmem>>, vector<32x32xbf16>
      %cst_17 = arith.constant dense<0.000000e+00> : vector<8x32xf32>
      %21 = tpu.matmul %19, %20, %cst_17 {dimension_numbers = #tpu.dot_dimension_numbers<[1], [0], [0], [1], [0, 0, 1, 1], [], []>} : vector<8x32xbf16>, vector<32x32xbf16>, vector<8x32xf32> -> vector<8x32xf32>
      %c0_18 = arith.constant 0 : index
      %c0_19 = arith.constant 0 : index
      %22 = vector.load %arg6[%c0_18, %c0_19] : memref<1x32xf32, #tpu.memory_space<vmem>>, vector<1x32xf32>
      %23 = vector.broadcast %22 : vector<1x32xf32> to vector<8x32xf32>
      %24 = arith.addf %21, %23 : vector<8x32xf32>
      %cst_20 = arith.constant 0.000000e+00 : f32
      %25 = vector.broadcast %cst_20 : f32 to vector<8x32xf32>
      %26 = arith.maximumf %24, %25 : vector<8x32xf32>
      %27 = arith.truncf %26 : vector<8x32xf32> to vector<8x32xbf16>
      %c0_21 = arith.constant 0 : index
      %c0_22 = arith.constant 0 : index
      %28 = vector.load %arg7[%c0_21, %c0_22] : memref<32x128xbf16, #tpu.memory_space<vmem>>, vector<32x128xbf16>
      %cst_23 = arith.constant dense<0.000000e+00> : vector<8x128xf32>
      %29 = tpu.matmul %27, %28, %cst_23 {dimension_numbers = #tpu.dot_dimension_numbers<[1], [0], [0], [1], [0, 0, 1, 1], [], []>} : vector<8x32xbf16>, vector<32x128xbf16>, vector<8x128xf32> -> vector<8x128xf32>
      %c0_24 = arith.constant 0 : index
      %c0_25 = arith.constant 0 : index
      %30 = vector.load %arg8[%c0_24, %c0_25] : memref<1x128xf32, #tpu.memory_space<vmem>>, vector<1x128xf32>
      %31 = vector.broadcast %30 : vector<1x128xf32> to vector<8x128xf32>
      %32 = arith.addf %29, %31 : vector<8x128xf32>
      %c0_26 = arith.constant 0 : index
      %c0_27 = arith.constant 0 : index
      %33 = vector.load %arg9[%c0_26, %c0_27] : memref<8x128xf32, #tpu.memory_space<vmem>>, vector<8x128xf32>
      tpu.vector_store %arg9[%c0_26, %c0_27], %32 {strides = array<i32>} : memref<8x128xf32, #tpu.memory_space<vmem>>, vector<8x128xf32>,
    } else {
    }
    return
  }
  func.func @transform_0(%arg0: i32, %arg1: i32) -> (i32, i32) {
    %c0_i32 = arith.constant 0 : i32
    return %arg0, %arg1 : i32, i32
  }
  func.func @transform_1(%arg0: i32, %arg1: i32) -> (i32, i32) {
    %c0_i32 = arith.constant 0 : i32
    %c0_i32_0 = arith.constant 0 : i32
    %c0_i32_1 = arith.constant 0 : i32
    return %c0_i32, %c0_i32_0 : i32, i32
  }
  func.func @transform_2(%arg0: i32, %arg1: i32) -> (i32, i32) {
    %c0_i32 = arith.constant 0 : i32
    %c0_i32_0 = arith.constant 0 : i32
    %c0_i32_1 = arith.constant 0 : i32
    return %c0_i32, %c0_i32_0 : i32, i32
  }
  func.func @transform_3(%arg0: i32, %arg1: i32) -> (i32, i32) {
    %c0_i32 = arith.constant 0 : i32
    %c0_i32_0 = arith.constant 0 : i32
    %c0_i32_1 = arith.constant 0 : i32
    return %c0_i32, %c0_i32_0 : i32, i32
  }
  func.func @transform_4(%arg0: i32, %arg1: i32) -> (i32, i32) {
    %c0_i32 = arith.constant 0 : i32
    %c0_i32_0 = arith.constant 0 : i32
    %c0_i32_1 = arith.constant 0 : i32
    return %c0_i32, %c0_i32_0 : i32, i32
  }
  func.func @transform_5(%arg0: i32, %arg1: i32) -> (i32, i32) {
    %c0_i32 = arith.constant 0 : i32
    %c0_i32_0 = arith.constant 0 : i32
    %c0_i32_1 = arith.constant 0 : i32
    return %c0_i32, %c0_i32_0 : i32, i32
  }
  func.func @transform_6(%arg0: i32, %arg1: i32) -> (i32, i32) {
    %c0_i32 = arith.constant 0 : i32
    %c0_i32_0 = arith.constant 0 : i32
    %c0_i32_1 = arith.constant 0 : i32
    return %c0_i32, %c0_i32_0 : i32, i32
  }
  func.func @transform_7(%arg0: i32, %arg1: i32) -> (i32, i32) {
    %c0_i32 = arith.constant 0 : i32
    %c0_i32_0 = arith.constant 0 : i32
    return %arg0, %c0_i32 : i32, i32
  }
}

</mosaic_0001>

<bundles_post_ra>
// kernel: tpu_custom_call.1
= control target key start
LH: loop header
LB: loop body
LE: loop exit
PB: predicated region body
PF: predicated region fallthrough
CT: control target
= control target key end

     0   :  { %s625_s0 = inlined_call_operand.vmem [shape: f32[8,256], index: 0, kind: input, shape index: {}]   ;;  %s626_s1 = inlined_call_operand.vmem [shape: bf16[256,32], index: 1, kind: input, shape index: {}]   ;;  %s627_s2 = inlined_call_operand.vmem [shape: f32[1,32], index: 2, kind: input, shape index: {}]   ;;  %s628_s3 = inlined_call_operand.vmem [shape: bf16[32,32], index: 3, kind: input, shape index: {}]   ;;  %s629_s4 = inlined_call_operand.vmem [shape: f32[1,32], index: 4, kind: input, shape index: {}]   ;;  %s630_s5 = inlined_call_operand.vmem [shape: bf16[32,128], index: 5, kind: input, shape index: {}]   ;;  %s631_s6 = inlined_call_operand.vmem [shape: f32[1,128], index: 6, kind: input, shape index: {}]   ;;  %s632_s7 = inlined_call_operand.hbm [shape: f32[8,128], index: 7, kind: output, shape index: {}]  }
   0x1   :  { %v445_v0 = vld [vmem:[%s626_s1 + $0x40] sm:$0xff]   ;;  %v447_v2 = vld [vmem:[%s626_s1 + $0x48] sm:$0xff]   ;;  %v449_v4 = vld [vmem:[%s626_s1 + $0x50] sm:$0xff]  }
   0x2   :  { %v446_v1 = vld [vmem:[%s626_s1] sm:$0xff]   ;;  %398 = vmatprep.subr.bf16.mxu0 %v445_v0  ;;  %v448_v3 = vld [vmem:[%s626_s1 + $0x8] sm:$0xff]   ;;  %v450_v5 = vld [vmem:[%s626_s1 + $0x10] sm:$0xff]  }
   0x3   :  { %399 = vmatpush3.bf16.msra.mxu0 %v446_v1  ;;  %v451_v6 = vld [vmem:[%s626_s1 + $0x58] sm:$0xff]   ;;  %v453_v8 = vld [vmem:[%s626_s1 + $0x60] sm:$0xff]   ;;  %v455_v10 = vld [vmem:[%s626_s1 + $0x68] sm:$0xff]  }
   0x4   :  { %400 = vmatprep.subr.bf16.mxu0 %v447_v2  ;;  %v452_v7 = vld [vmem:[%s626_s1 + $0x18] sm:$0xff]   ;;  %v454_v9 = vld [vmem:[%s626_s1 + $0x20] sm:$0xff]   ;;  %v35_v11 = vld [vmem:[%s625_s0 + $0x8] sm:$0xff] }
   0x5   :  { %v37_v12 = vpack.c.bf16 %v35_v11, %v35_v11  ;;  %v456_v13 = vld [vmem:[%s626_s1 + $0x28] sm:$0xff]  }
   0x7   :  { %401 = vmatpush3.bf16.msra.mxu0 %v448_v3  ;;  %199 = vmatprep.mubr.bf16.mxu0 %v37_v12 }
   0x8   :  { %402 = vmatprep.subr.bf16.mxu0 %v449_v4 }
   0xb   :  { %403 = vmatpush3.bf16.msra.mxu0 %v450_v5 }
   0xc   :  { %404 = vmatprep.subr.bf16.mxu0 %v451_v6 }
   0xf   :  { %405 = vmatpush3.bf16.msra.mxu0 %v452_v7 }
  0x10   :  { %406 = vmatprep.subr.bf16.mxu0 %v453_v8 }
  0x13   :  { %407 = vmatpush3.bf16.msra.mxu0 %v454_v9 }
  0x14   :  { %12 = vsyncpa [#allocation4], 0  ;;  %408 = vmatprep.subr.bf16.mxu0 %v455_v10  ;;  %v457_v14 = vld [vmem:[%s626_s1 + $0x70] sm:$0xff]   ;;  %v459_v16 = vld [vmem:[%s626_s1 + $0x78] sm:$0xff]   ;;  %vm32_vm0 = vcmask 261120   ;;  %v489_v20 = vmov 0.0  }
  0x15   :  { %v458_v15 = vld [vmem:[%s626_s1 + $0x30] sm:$0xff]   ;;  %v460_v17 = vld [vmem:[%s626_s1 + $0x38] sm:$0xff]   ;;  %v34_v18 = vld [vmem:[%s625_s0] sm:$0xff]  ;;  %33 = vst.msk [vmem:[#allocation2] sm:$0xff] %vm32_vm0, %v489_v20  ;;  %426 = vmatprep.subr.bf16.mxu1 %v489_v20  ;;  %vm490_vm1 = vmmov 0   ;;  %s491_s24 = smov [#allocation3]  }
  0x16   :  { %v36_v19 = vpack.c.bf16 %v34_v18, %v34_v18  ;;  %v461_v21 = vld [vmem:[%s628_s3] sm:$0xff]   ;;  %430 = vmatprep.mubr.msk.bf16.mxu1 %vm490_vm1, %v489_v20  ;;  %v462_v22 = vld [vmem:[%s628_s3 + $0x8] sm:$0xff]  }
  0x17   :  { %409 = vmatpush3.bf16.msra.mxu0 %v456_v13  ;;  %427 = vmatpush3.bf16.msra.mxu1 %v461_v21  ;;  %v389_v30 = vld [vmem:[%s627_s2] ss:$0 sm:$0xff]  ;;  %v464_v36 = vld [vmem:[%s630_s5 + $0x8] sm:$0xff]  }
  0x18   :  { %410 = vmatprep.subr.bf16.mxu0 %v457_v14  ;;  %428 = vmatprep.subr.bf16.mxu1 %v489_v20  ;;  %v463_v34 = vld [vmem:[%s630_s5] sm:$0xff]   ;;  %s365_s5 = sshll.u32 %s491_s24, 4  ;;  %s366_s5 = int_to_ptr.vmem [resolvable:$true] %s365_s5 }
  0x19   :  { %v390_v37 = vld [vmem:[%s629_s4] ss:$0 sm:$0xff]  ;;  %s465_s4 = scalar_lea.vmem %s366_s5, 128  ;;  %p470_p1 = scmp.lt.s32.totalorder %s366_s5, %s366_s5 }
  0x1a   :  { %v394_v45 = vld [vmem:[%s631_s6] ss:$0 sm:$0xff]  ;;  %p466_p0 = scmp.ne.s32.totalorder %s366_s5, %s465_s4  ;;  %p471_p2 = scmp.lt.s32.totalorder %s465_s4, %s465_s4 }
  0x1b   :  { %411 = vmatpush3.bf16.msra.mxu0 %v458_v15  ;;  %429 = vmatpush3.bf16.msra.mxu1 %v462_v22 }
  0x1c   :  { %412 = vmatprep.subr.bf16.mxu0 %v459_v16  ;;  %434 = vmatprep.subr.bf16.mxu1 %v489_v20  ;;  %v38_v24 = vld [vmem:[#allocation2] sm:$0xff]  ;;  %p472_p3 = por %p471_p2, %p470_p1 }
  0x1e   :  { %p473_p4 = pnand %p472_p3, %p466_p0 }
  0x1f   :  { %413 = vmatpush3.bf16.msra.mxu0 %v460_v17 }
  0x22   :  { %200 = vmatmul.mubr.bf16.vlgmr.msra.gmra.mrb[0].mxu0 %v36_v19 }
  0xf5   :  { %v414_v23 = vpop.f32.mrb[0].mxu0 }
  0xf6   :  { %v415_v25 = vpop.f32.mrb[1].mxu0 }
  0xf7   :  { %v416_v26 = vadd.f32 %v415_v25, %v414_v23  ;;  %v417_v27 = vpop.f32.mrb[2].mxu0 }
  0xf8   :  { %v418_v28 = vpop.f32.mrb[3].mxu0 }
  0xf9   :  { %v207_v29 = vadd.f32 %v416_v26, %v38_v24 }
  0xfb   :  { %209 = vst.msk [vmem:[#allocation2] sm:$0xff] %vm32_vm0, %v207_v29 }
 0x102   :  { %v213_v31 = vld [vmem:[#allocation2] sm:$0xff] }
 0x103   :  { %v221_v32 = vadd.f32 %v389_v30, %v213_v31 }
 0x105   :  { %v222_v33 = vmax.f32 %v221_v32, 0.0 }
 0x107   :  { %v223_v35 = vpack.c.bf16 %v222_v33, %v222_v33 }
 0x109   :  { %431 = vmatmul.mubr.msk.bf16.vlgmr.msra.gmra.mrb[0].mxu1 %vm32_vm0, %v223_v35 }
 0x10a   :  { %435 = vmatpush3.bf16.msra.mxu1 %v463_v34  ;;  %438 = vmatprep.mubr.msk.bf16.mxu1 %vm490_vm1, %v489_v20 }
 0x10b   :  { %436 = vmatprep.subr.bf16.mxu1 %v489_v20 }
 0x10e   :  { %437 = vmatpush3.bf16.msra.mxu1 %v464_v36 }
 0x1dc   :  { %v284_v38 = vpop.f32.mrb[0].mxu1 }
 0x1dd   :  { %v285_v39 = vadd.f32 %v390_v37, %v284_v38  ;;  %v432_v40 = vpop.f32.mrb[1].mxu1 }
 0x1de   :  { %v287_v41 = vpop.f32.mrb[2].mxu1 }
 0x1df   :  { %v290_v42 = vmax.f32 %v285_v39, 0.0  ;;  %v433_v43 = vpop.f32.mrb[3].mxu1 }
 0x1e1   :  { %v291_v44 = vpack.c.bf16 %v290_v42, %v290_v42 }
 0x1e3   :  { %439 = vmatmul.mubr.msk.bf16.vlgmr.msra.gmra.mrb[4].mxu1 %vm32_vm0, %v291_v44 }
 0x2b6   :  { %v352_v46 = vpop.f32.mrb[4].mxu1 }
 0x2b7   :  { %v353_v47 = vadd.f32 %v394_v45, %v352_v46  ;;  %v440_v48 = vpop.f32.mrb[5].mxu1 }
 0x2b8   :  { %v355_v49 = vpop.f32.mrb[6].mxu1 }
 0x2b9   :  { %358 = vst [vmem:[#allocation3] sm:$0xff] %v353_v47  ;;  %v441_v50 = vpop.f32.mrb[7].mxu1 }
 0x2ba   :  { %476 = shalt.err (!%p473_p4)
}
 0x2bb   :  { %s477_s6 = scalar_lea.hbm %s632_s7, 128 }
 0x2bc   :  { %p478_p5 = scmp.ne.s32.totalorder %s632_s7, %s477_s6  ;;  %p481_p6 = scmp.lt.u32.totalorder %s477_s6, %s632_s7 }
 0x2be   :  { %p483_p7 = pnand %p481_p6, %p478_p5 }
 0x2c0   :  { %486 = shalt.err (!%p483_p7)
}
 0x2c1   :  { %368 = dma.vmem_to_hbm [thread:$0]  %s366_s5, 128, %s632_s7, [#allocation4]  }
 0x2c2   :  { %487 = dma.done.wait [#allocation4], 128  }
 0x2c3   :  { %488 = vsyncadd [#allocation4], 4294967168 }
 0x2c4   :  { %372 = vsyncpa [#allocation4], 1 }

// kernel: tpu_custom_call.1
= control target key start
LH: loop header
LB: loop body
LE: loop exit
PB: predicated region body
PF: predicated region fallthrough
CT: control target
= control target key end

     0   :  { %s625_s0 = inlined_call_operand.vmem [shape: f32[8,256], index: 0, kind: input, shape index: {}]   ;;  %s626_s1 = inlined_call_operand.vmem [shape: bf16[256,32], index: 1, kind: input, shape index: {}]   ;;  %s627_s2 = inlined_call_operand.vmem [shape: f32[1,32], index: 2, kind: input, shape index: {}]   ;;  %s628_s3 = inlined_call_operand.vmem [shape: bf16[32,32], index: 3, kind: input, shape index: {}]   ;;  %s629_s4 = inlined_call_operand.vmem [shape: f32[1,32], index: 4, kind: input, shape index: {}]   ;;  %s630_s5 = inlined_call_operand.vmem [shape: bf16[32,128], index: 5, kind: input, shape index: {}]   ;;  %s631_s6 = inlined_call_operand.vmem [shape: f32[1,128], index: 6, kind: input, shape index: {}]   ;;  %s632_s7 = inlined_call_operand.hbm [shape: f32[8,128], index: 7, kind: output, shape index: {}]  }
   0x1   :  { %v445_v0 = vld [vmem:[%s626_s1 + $0x40] sm:$0xff]   ;;  %v447_v2 = vld [vmem:[%s626_s1 + $0x48] sm:$0xff]   ;;  %v449_v4 = vld [vmem:[%s626_s1 + $0x50] sm:$0xff]  }
   0x2   :  { %v446_v1 = vld [vmem:[%s626_s1] sm:$0xff]   ;;  %398 = vmatprep.subr.bf16.mxu0 %v445_v0  ;;  %v448_v3 = vld [vmem:[%s626_s1 + $0x8] sm:$0xff]   ;;  %v450_v5 = vld [vmem:[%s626_s1 + $0x10] sm:$0xff]  }
   0x3   :  { %399 = vmatpush3.bf16.msra.mxu0 %v446_v1  ;;  %v451_v6 = vld [vmem:[%s626_s1 + $0x58] sm:$0xff]   ;;  %v453_v8 = vld [vmem:[%s626_s1 + $0x60] sm:$0xff]   ;;  %v455_v10 = vld [vmem:[%s626_s1 + $0x68] sm:$0xff]  }
   0x4   :  { %400 = vmatprep.subr.bf16.mxu0 %v447_v2  ;;  %v452_v7 = vld [vmem:[%s626_s1 + $0x18] sm:$0xff]   ;;  %v454_v9 = vld [vmem:[%s626_s1 + $0x20] sm:$0xff]   ;;  %v35_v11 = vld [vmem:[%s625_s0 + $0x8] sm:$0xff] }
   0x5   :  { %v37_v12 = vpack.c.bf16 %v35_v11, %v35_v11  ;;  %v456_v13 = vld [vmem:[%s626_s1 + $0x28] sm:$0xff]  }
   0x7   :  { %401 = vmatpush3.bf16.msra.mxu0 %v448_v3  ;;  %199 = vmatprep.mubr.bf16.mxu0 %v37_v12 }
   0x8   :  { %402 = vmatprep.subr.bf16.mxu0 %v449_v4 }
   0xb   :  { %403 = vmatpush3.bf16.msra.mxu0 %v450_v5 }
   0xc   :  { %404 = vmatprep.subr.bf16.mxu0 %v451_v6 }
   0xf   :  { %405 = vmatpush3.bf16.msra.mxu0 %v452_v7 }
  0x10   :  { %406 = vmatprep.subr.bf16.mxu0 %v453_v8 }
  0x13   :  { %407 = vmatpush3.bf16.msra.mxu0 %v454_v9 }
  0x14   :  { %12 = vsyncpa [#allocation4], 0  ;;  %408 = vmatprep.subr.bf16.mxu0 %v455_v10  ;;  %v457_v14 = vld [vmem:[%s626_s1 + $0x70] sm:$0xff]   ;;  %v459_v16 = vld [vmem:[%s626_s1 + $0x78] sm:$0xff]   ;;  %vm32_vm0 = vcmask 261120   ;;  %v489_v20 = vmov 0.0  }
  0x15   :  { %v458_v15 = vld [vmem:[%s626_s1 + $0x30] sm:$0xff]   ;;  %v460_v17 = vld [vmem:[%s626_s1 + $0x38] sm:$0xff]   ;;  %v34_v18 = vld [vmem:[%s625_s0] sm:$0xff]  ;;  %33 = vst.msk [vmem:[#allocation2] sm:$0xff] %vm32_vm0, %v489_v20  ;;  %426 = vmatprep.subr.bf16.mxu1 %v489_v20  ;;  %vm490_vm1 = vmmov 0   ;;  %s491_s24 = smov [#allocation3]  }
  0x16   :  { %v36_v19 = vpack.c.bf16 %v34_v18, %v34_v18  ;;  %v461_v21 = vld [vmem:[%s628_s3] sm:$0xff]   ;;  %430 = vmatprep.mubr.msk.bf16.mxu1 %vm490_vm1, %v489_v20  ;;  %v462_v22 = vld [vmem:[%s628_s3 + $0x8] sm:$0xff]  }
  0x17   :  { %409 = vmatpush3.bf16.msra.mxu0 %v456_v13  ;;  %427 = vmatpush3.bf16.msra.mxu1 %v461_v21  ;;  %v389_v30 = vld [vmem:[%s627_s2] ss:$0 sm:$0xff]  ;;  %v464_v36 = vld [vmem:[%s630_s5 + $0x8] sm:$0xff]  }
  0x18   :  { %410 = vmatprep.subr.bf16.mxu0 %v457_v14  ;;  %428 = vmatprep.subr.bf16.mxu1 %v489_v20  ;;  %v463_v34 = vld [vmem:[%s630_s5] sm:$0xff]   ;;  %s365_s5 = sshll.u32 %s491_s24, 4  ;;  %s366_s5 = int_to_ptr.vmem [resolvable:$true] %s365_s5 }
  0x19   :  { %v390_v37 = vld [vmem:[%s629_s4] ss:$0 sm:$0xff]  ;;  %s465_s4 = scalar_lea.vmem %s366_s5, 128  ;;  %p470_p1 = scmp.lt.s32.totalorder %s366_s5, %s366_s5 }
  0x1a   :  { %v394_v45 = vld [vmem:[%s631_s6] ss:$0 sm:$0xff]  ;;  %p466_p0 = scmp.ne.s32.totalorder %s366_s5, %s465_s4  ;;  %p471_p2 = scmp.lt.s32.totalorder %s465_s4, %s465_s4 }
  0x1b   :  { %411 = vmatpush3.bf16.msra.mxu0 %v458_v15  ;;  %429 = vmatpush3.bf16.msra.mxu1 %v462_v22 }
  0x1c   :  { %412 = vmatprep.subr.bf16.mxu0 %v459_v16  ;;  %434 = vmatprep.subr.bf16.mxu1 %v489_v20  ;;  %v38_v24 = vld [vmem:[#allocation2] sm:$0xff]  ;;  %p472_p3 = por %p471_p2, %p470_p1 }
  0x1e   :  { %p473_p4 = pnand %p472_p3, %p466_p0 }
  0x1f   :  { %413 = vmatpush3.bf16.msra.mxu0 %v460_v17 }
  0x22   :  { %200 = vmatmul.mubr.bf16.vlgmr.msra.gmra.mrb[0].mxu0 %v36_v19 }
  0xf5   :  { %v414_v23 = vpop.f32.mrb[0].mxu0 }
  0xf6   :  { %v415_v25 = vpop.f32.mrb[1].mxu0 }
  0xf7   :  { %v416_v26 = vadd.f32 %v415_v25, %v414_v23  ;;  %v417_v27 = vpop.f32.mrb[2].mxu0 }
  0xf8   :  { %v418_v28 = vpop.f32.mrb[3].mxu0 }
  0xf9   :  { %v207_v29 = vadd.f32 %v416_v26, %v38_v24 }
  0xfb   :  { %209 = vst.msk [vmem:[#allocation2] sm:$0xff] %vm32_vm0, %v207_v29 }
 0x102   :  { %v213_v31 = vld [vmem:[#allocation2] sm:$0xff] }
 0x103   :  { %v221_v32 = vadd.f32 %v389_v30, %v213_v31 }
 0x105   :  { %v222_v33 = vmax.f32 %v221_v32, 0.0 }
 0x107   :  { %v223_v35 = vpack.c.bf16 %v222_v33, %v222_v33 }
 0x109   :  { %431 = vmatmul.mubr.msk.bf16.vlgmr.msra.gmra.mrb[0].mxu1 %vm32_vm0, %v223_v35 }
 0x10a   :  { %435 = vmatpush3.bf16.msra.mxu1 %v463_v34  ;;  %438 = vmatprep.mubr.msk.bf16.mxu1 %vm490_vm1, %v489_v20 }
 0x10b   :  { %436 = vmatprep.subr.bf16.mxu1 %v489_v20 }
 0x10e   :  { %437 = vmatpush3.bf16.msra.mxu1 %v464_v36 }
 0x1dc   :  { %v284_v38 = vpop.f32.mrb[0].mxu1 }
 0x1dd   :  { %v285_v39 = vadd.f32 %v390_v37, %v284_v38  ;;  %v432_v40 = vpop.f32.mrb[1].mxu1 }
 0x1de   :  { %v287_v41 = vpop.f32.mrb[2].mxu1 }
 0x1df   :  { %v290_v42 = vmax.f32 %v285_v39, 0.0  ;;  %v433_v43 = vpop.f32.mrb[3].mxu1 }
 0x1e1   :  { %v291_v44 = vpack.c.bf16 %v290_v42, %v290_v42 }
 0x1e3   :  { %439 = vmatmul.mubr.msk.bf16.vlgmr.msra.gmra.mrb[4].mxu1 %vm32_vm0, %v291_v44 }
 0x2b6   :  { %v352_v46 = vpop.f32.mrb[4].mxu1 }
 0x2b7   :  { %v353_v47 = vadd.f32 %v394_v45, %v352_v46  ;;  %v440_v48 = vpop.f32.mrb[5].mxu1 }
 0x2b8   :  { %v355_v49 = vpop.f32.mrb[6].mxu1 }
 0x2b9   :  { %358 = vst [vmem:[#allocation3] sm:$0xff] %v353_v47  ;;  %v441_v50 = vpop.f32.mrb[7].mxu1 }
 0x2ba   :  { %476 = shalt.err (!%p473_p4)
}
 0x2bb   :  { %s477_s6 = scalar_lea.hbm %s632_s7, 128 }
 0x2bc   :  { %p478_p5 = scmp.ne.s32.totalorder %s632_s7, %s477_s6  ;;  %p481_p6 = scmp.lt.u32.totalorder %s477_s6, %s632_s7 }
 0x2be   :  { %p483_p7 = pnand %p481_p6, %p478_p5 }
 0x2c0   :  { %486 = shalt.err (!%p483_p7)
}
 0x2c1   :  { %368 = dma.vmem_to_hbm [thread:$0]  %s366_s5, 128, %s632_s7, [#allocation4]  }
 0x2c2   :  { %487 = dma.done.wait [#allocation4], 128  }
 0x2c3   :  { %488 = vsyncadd [#allocation4], 4294967168 }
 0x2c4   :  { %372 = vsyncpa [#allocation4], 1 }

</bundles_post_ra>
